<compile_context>
chip_gen: v6e
topology: v6e:2x2x1
jax: 0.10.0
libtpu: 0.0.40
codegen_flags: <defaults>
</compile_context>

<pallas_src>
import functools

import jax
import jax.numpy as jnp
from jax.experimental import pallas as pl
from jax.experimental.pallas import tpu as pltpu

LANE = 128


def _round_up(v, m):
    return (v + m - 1) // m * m


def _fit_tile(n_pad, preferred):
    """Largest multiple of 128 <= preferred that divides n_pad (n_pad is a multiple of 128)."""
    t = max(LANE, (min(preferred, n_pad) // LANE) * LANE)
    while n_pad % t:
        t -= LANE
    return t


def _pad2(m, rows, cols):
    return jnp.pad(m, ((0, rows - m.shape[0]), (0, cols - m.shape[1])))


def _vmem_limit_bytes():
    """Generation-aware scoped-VMEM budget (48 MiB on 64-MiB-VMEM parts, 64 MiB otherwise)."""
    try:
        info = pltpu.get_tpu_info()
        vmem = getattr(info, "vmem_capacity_bytes", 128 * 1024 * 1024)
    except Exception:  # pragma: no cover - CPU / interpret fallback
        vmem = 128 * 1024 * 1024
    if vmem <= 64 * 1024 * 1024:
        return 48 * 1024 * 1024
    return 64 * 1024 * 1024


# ---------------------------------------------------------------------------
# Kernel 1: fused per-row-tile linear transforms
#   H_cat = X @ [W_l | W_r] + [0 | b_l];  H_l = H_cat[:, :F] (bf16), H_r = H_cat[:, F:] (f32)
# ---------------------------------------------------------------------------
def _lin_kernel(x_ref, w_ref, b_ref, hl_ref, hr_ref, *, f_out_p):
    xb = x_ref[...].astype(jnp.bfloat16)
    h = jnp.dot(xb, w_ref[...], preferred_element_type=jnp.float32) + b_ref[...]
    hl_ref[...] = h[:, :f_out_p].astype(hl_ref.dtype)   # bf16, feeds the big MXU matmul
    hr_ref[...] = h[:, f_out_p:]                         # f32, bias folded in; added in finalize


def linear_transform(x, w_cat, b_cat, *, tm, f_out_p, vmem_limit):
    n_pad, f_in_p = x.shape
    two_f = w_cat.shape[1]
    grid = (n_pad // tm,)
    kernel = functools.partial(_lin_kernel, f_out_p=f_out_p)
    return pl.pallas_call(
        kernel,
        out_shape=(
            jax.ShapeDtypeStruct((n_pad, f_out_p), jnp.bfloat16),
            jax.ShapeDtypeStruct((n_pad, f_out_p), jnp.float32),
        ),
        grid_spec=pltpu.PrefetchScalarGridSpec(
            num_scalar_prefetch=0,
            grid=grid,
            in_specs=[
                pl.BlockSpec((tm, f_in_p), lambda i: (i, 0)),      # x row tile
                pl.BlockSpec((f_in_p, two_f), lambda i: (0, 0)),   # [W_l | W_r] (resident)
                pl.BlockSpec((1, two_f), lambda i: (0, 0)),        # [0 | b_l]
            ],
            out_specs=[
                pl.BlockSpec((tm, f_out_p), lambda i: (i, 0)),
                pl.BlockSpec((tm, f_out_p), lambda i: (i, 0)),
            ],
        ),
        compiler_params=pltpu.CompilerParams(
            dimension_semantics=("parallel",),
            vmem_limit_bytes=vmem_limit,
        ),
    )(x, w_cat, b_cat)


# ---------------------------------------------------------------------------
# Kernel 2: tiled aggregation matmul  out = (A_counts @ H_l) * inv_deg + H_r  (+ ReLU)
# grid = (row tiles, K-reduction tiles);  f32 accumulator in VMEM scratch.
# ---------------------------------------------------------------------------
def _agg_kernel(a_ref, hl_ref, hr_ref, invdeg_ref, o_ref, acc_ref, *, apply_relu):
    k = pl.program_id(1)

    @pl.when(k == 0)
    def _():
        acc_ref[...] = jnp.zeros_like(acc_ref)

    acc_ref[...] += jnp.dot(a_ref[...], hl_ref[...],
                            preferred_element_type=jnp.float32)

    @pl.when(k == pl.num_programs(1) - 1)
    def _():
        out = acc_ref[...] * invdeg_ref[...] + hr_ref[...]   # f32 mean-normalization + bias
        if apply_relu:
            out = jnp.maximum(out, 0.0)
        o_ref[...] = out.astype(o_ref.dtype)


def aggregate(a_counts, h_l, h_r, inv_deg, *, tm, tk, apply_relu, out_dtype, vmem_limit):
    n_pad = a_counts.shape[0]
    f_out_p = h_l.shape[1]
    grid = (n_pad // tm, n_pad // tk)
    kernel = functools.partial(_agg_kernel, apply_relu=apply_relu)
    out_bytes = 2 if out_dtype == jnp.bfloat16 else 4
    flops = 2 * n_pad * n_pad * f_out_p
    bytes_accessed = (
        n_pad * n_pad * 2                      # A_counts (bf16)
        + n_pad * f_out_p * 2 * grid[0]        # H_l re-streamed per row tile
        + n_pad * f_out_p * 4                  # H_r (f32)
        + n_pad * f_out_p * out_bytes          # out
    )
    return pl.pallas_call(
        kernel,
        out_shape=jax.ShapeDtypeStruct((n_pad, f_out_p), out_dtype),
        grid_spec=pltpu.PrefetchScalarGridSpec(
            num_scalar_prefetch=0,
            grid=grid,
            in_specs=[
                pl.BlockSpec((tm, tk), lambda i, k: (i, k)),          # A_counts tile
                pl.BlockSpec((tk, f_out_p), lambda i, k: (k, 0)),     # H_l k-block
                pl.BlockSpec((tm, f_out_p), lambda i, k: (i, 0)),     # H_r row block
                pl.BlockSpec((tm, 1), lambda i, k: (i, 0)),           # inv_deg row block
            ],
            out_specs=pl.BlockSpec((tm, f_out_p), lambda i, k: (i, 0)),
            scratch_shapes=[pltpu.VMEM((tm, f_out_p), jnp.float32)],
        ),
        compiler_params=pltpu.CompilerParams(
            dimension_semantics=("parallel", "arbitrary"),
            vmem_limit_bytes=vmem_limit,
        ),
        cost_estimate=pl.CostEstimate(
            flops=flops, transcendentals=0, bytes_accessed=bytes_accessed),
    )(a_counts, h_l, h_r, inv_deg)


# ---------------------------------------------------------------------------
# Glue: bf16 edge-count adjacency (exact small integers) + f32 inverse degree.
# ---------------------------------------------------------------------------
def build_counts_and_invdeg(edge_index, num_nodes_padded):
    src = edge_index[0]
    dst = edge_index[1]
    counts = jnp.zeros((num_nodes_padded, num_nodes_padded), jnp.bfloat16)
    counts = counts.at[dst, src].add(jnp.bfloat16(1.0))   # duplicate edges counted, like PyG mean
    deg = jnp.zeros((num_nodes_padded, 1), jnp.float32).at[dst].add(1.0)
    inv_deg = 1.0 / jnp.maximum(deg, 1.0)                  # zero-in-degree rows stay all-zero
    return counts, inv_deg


def gnn_forward(x, edge_index, params, *, tm=2048, tk=1024):
    n, f_in = x.shape
    hidden = params["w_l1"].shape[1]
    f_out = params["w_l2"].shape[1]

    n_pad = _round_up(max(n, LANE), LANE)
    f_in_p = _round_up(f_in, LANE)
    h_p = _round_up(hidden, LANE)
    f_out_p = _round_up(f_out, LANE)

    # Keep >= 2 row tiles so the "parallel" axis can split across v7x's two TensorCores.
    if n_pad >= 2 * LANE:
        tm = min(tm, n_pad // 2)
    tm = _fit_tile(n_pad, tm)
    tk = _fit_tile(n_pad, tk)
    vmem_limit = _vmem_limit_bytes()

    a_counts, inv_deg = build_counts_and_invdeg(edge_index, n_pad)

    x_p = _pad2(x, n_pad, f_in_p)

    # ---- layer 1 ----
    w1 = jnp.concatenate(
        [_pad2(params["w_l1"], f_in_p, h_p), _pad2(params["w_r1"], f_in_p, h_p)],
        axis=1).astype(jnp.bfloat16)
    b1 = jnp.concatenate(
        [jnp.zeros((h_p,), jnp.float32),
         jnp.pad(params["b_l1"], (0, h_p - hidden))]).reshape(1, 2 * h_p)

    hl1, hr1 = linear_transform(x_p, w1, b1, tm=tm, f_out_p=h_p, vmem_limit=vmem_limit)
    h = aggregate(a_counts, hl1, hr1, inv_deg, tm=tm, tk=tk,
                  apply_relu=True, out_dtype=jnp.bfloat16, vmem_limit=vmem_limit)

    # ---- layer 2 ----
    w2 = jnp.concatenate(
        [_pad2(params["w_l2"], h_p, f_out_p), _pad2(params["w_r2"], h_p, f_out_p)],
        axis=1).astype(jnp.bfloat16)
    b2 = jnp.concatenate(
        [jnp.zeros((f_out_p,), jnp.float32),
         jnp.pad(params["b_l2"], (0, f_out_p - f_out))]).reshape(1, 2 * f_out_p)

    hl2, hr2 = linear_transform(h, w2, b2, tm=tm, f_out_p=f_out_p, vmem_limit=vmem_limit)
    out = aggregate(a_counts, hl2, hr2, inv_deg, tm=tm, tk=tk,
                    apply_relu=False, out_dtype=jnp.float32, vmem_limit=vmem_limit)

    return out[:n, :f_out]


def gnn_reference(x, edge_index, params):
    """Pure-JAX f32 reference (original association) for a correctness check."""
    n = x.shape[0]
    src, dst = edge_index[0], edge_index[1]
    a = jnp.zeros((n, n), jnp.float32).at[dst, src].add(1.0)
    deg = jnp.sum(a, axis=1, keepdims=True)
    a = a / jnp.maximum(deg, 1.0)
    h = a @ x @ params["w_l1"] + params["b_l1"] + x @ params["w_r1"]
    h = jnp.maximum(h, 0.0)
    out = a @ h @ params["w_l2"] + params["b_l2"] + h @ params["w_r2"]
    return out


def init_params(key, in_channels, hidden_channels, out_channels):
    ks = jax.random.split(key, 4)
    scale1 = 1.0 / jnp.sqrt(in_channels)
    scale2 = 1.0 / jnp.sqrt(hidden_channels)
    return {
        "w_l1": scale1 * jax.random.normal(ks[0], (in_channels, hidden_channels), jnp.float32),
        "w_r1": scale1 * jax.random.normal(ks[1], (in_channels, hidden_channels), jnp.float32),
        "b_l1": jnp.zeros((hidden_channels,), jnp.float32),
        "w_l2": scale2 * jax.random.normal(ks[2], (hidden_channels, out_channels), jnp.float32),
        "w_r2": scale2 * jax.random.normal(ks[3], (hidden_channels, out_channels), jnp.float32),
        "b_l2": jnp.zeros((out_channels,), jnp.float32),
    }


if __name__ == "__main__":
    key = jax.random.PRNGKey(0)
    k_x, k_e, k_p = jax.random.split(key, 3)

    num_nodes = 16
    in_channels = 8
    hidden_channels = 32
    out_channels = 16
    num_edges = 40

    x = jax.random.normal(k_x, (num_nodes, in_channels), jnp.float32)
    edge_index = jax.random.randint(k_e, (2, num_edges), 0, num_nodes, dtype=jnp.int32)

    params = init_params(k_p, in_channels, hidden_channels, out_channels)

    out = gnn_forward(x, edge_index, params)
    jax.block_until_ready(out)

    assert out.shape == (num_nodes, out_channels)
    assert jnp.all(jnp.isfinite(out))

    ref = gnn_reference(x, edge_index, params)
    max_err = jnp.max(jnp.abs(out - ref))
    assert max_err < 0.1, f"mismatch vs reference: {max_err}"

    print("KERNEL_OK")
</pallas_src>

<mosaic_0001>
module attributes {stable_mosaic.version = 11 : i64} {
  func.func @_lin_kernel(%arg0: i32, %arg1: memref<128x128xf32, #tpu.memory_space<vmem>>, %arg2: memref<128x256xbf16, #tpu.memory_space<vmem>>, %arg3: memref<1x256xf32, #tpu.memory_space<vmem>>, %arg4: memref<128x128xbf16, #tpu.memory_space<vmem>>, %arg5: memref<128x128xf32, #tpu.memory_space<vmem>>) attributes {dimension_semantics = [#tpu.dimension_semantics<parallel>], iteration_bounds = array<i64: 1>, scalar_prefetch = 0 : i64, scratch_operands = 0 : i64, tpu.core_type = #tpu.core_type<tc>, window_params = [{transform_indices = @transform_0, window_bounds = array<i64: 128, 128>}, {pipeline_mode = #tpu.pipeline_mode<synchronous>, transform_indices = @transform_1, window_bounds = array<i64: 128, 256>}, {pipeline_mode = #tpu.pipeline_mode<synchronous>, transform_indices = @transform_2, window_bounds = array<i64: 1, 256>}, {transform_indices = @transform_3, window_bounds = array<i64: 128, 128>}, {transform_indices = @transform_4, window_bounds = array<i64: 128, 128>}]} {
    %c0 = arith.constant 0 : index
    %c0_0 = arith.constant 0 : index
    %0 = vector.load %arg1[%c0, %c0_0] : memref<128x128xf32, #tpu.memory_space<vmem>>, vector<128x128xf32>
    %1 = arith.truncf %0 : vector<128x128xf32> to vector<128x128xbf16>
    %c0_1 = arith.constant 0 : index
    %c0_2 = arith.constant 0 : index
    %2 = vector.load %arg2[%c0_1, %c0_2] : memref<128x256xbf16, #tpu.memory_space<vmem>>, vector<128x256xbf16>
    %cst = arith.constant dense<0.000000e+00> : vector<128x256xf32>
    %3 = tpu.matmul %1, %2, %cst {dimension_numbers = #tpu.dot_dimension_numbers<[1], [0], [0], [1], [0, 0, 1, 1], [], []>} : vector<128x128xbf16>, vector<128x256xbf16>, vector<128x256xf32> -> vector<128x256xf32>
    %c0_3 = arith.constant 0 : index
    %c0_4 = arith.constant 0 : index
    %4 = vector.load %arg3[%c0_3, %c0_4] : memref<1x256xf32, #tpu.memory_space<vmem>>, vector<1x256xf32>
    %5 = vector.broadcast %4 : vector<1x256xf32> to vector<128x256xf32>
    %6 = arith.addf %3, %5 : vector<128x256xf32>
    %7 = vector.extract_strided_slice %6 {offsets = [0, 0], sizes = [128, 128], strides = [1, 1]} : vector<128x256xf32> to vector<128x128xf32>
    %8 = arith.truncf %7 : vector<128x128xf32> to vector<128x128xbf16>
    %c0_5 = arith.constant 0 : index
    %c0_6 = arith.constant 0 : index
    %9 = vector.load %arg4[%c0_5, %c0_6] : memref<128x128xbf16, #tpu.memory_space<vmem>>, vector<128x128xbf16>
    tpu.vector_store %arg4[%c0_5, %c0_6], %8 {strides = array<i32>} : memref<128x128xbf16, #tpu.memory_space<vmem>>, vector<128x128xbf16>,
    %10 = vector.extract_strided_slice %6 {offsets = [0, 128], sizes = [128, 128], strides = [1, 1]} : vector<128x256xf32> to vector<128x128xf32>
    %c0_7 = arith.constant 0 : index
    %c0_8 = arith.constant 0 : index
    %11 = vector.load %arg5[%c0_7, %c0_8] : memref<128x128xf32, #tpu.memory_space<vmem>>, vector<128x128xf32>
    tpu.vector_store %arg5[%c0_7, %c0_8], %10 {strides = array<i32>} : memref<128x128xf32, #tpu.memory_space<vmem>>, vector<128x128xf32>,
    return
  }
  func.func @transform_0(%arg0: i32) -> (i32, i32) {
    %c0_i32 = arith.constant 0 : i32
    %c0_i32_0 = arith.constant 0 : i32
    return %arg0, %c0_i32 : i32, i32
  }
  func.func @transform_1(%arg0: i32) -> (i32, i32) {
    %c0_i32 = arith.constant 0 : i32
    %c0_i32_0 = arith.constant 0 : i32
    %c0_i32_1 = arith.constant 0 : i32
    return %c0_i32, %c0_i32_0 : i32, i32
  }
  func.func @transform_2(%arg0: i32) -> (i32, i32) {
    %c0_i32 = arith.constant 0 : i32
    %c0_i32_0 = arith.constant 0 : i32
    %c0_i32_1 = arith.constant 0 : i32
    return %c0_i32, %c0_i32_0 : i32, i32
  }
  func.func @transform_3(%arg0: i32) -> (i32, i32) {
    %c0_i32 = arith.constant 0 : i32
    %c0_i32_0 = arith.constant 0 : i32
    return %arg0, %c0_i32 : i32, i32
  }
  func.func @transform_4(%arg0: i32) -> (i32, i32) {
    %c0_i32 = arith.constant 0 : i32
    %c0_i32_0 = arith.constant 0 : i32
    return %arg0, %c0_i32 : i32, i32
  }
}

</mosaic_0001>

<bundles_post_ra>
// kernel: tpu_custom_call.1
= control target key start
LH: loop header
LB: loop body
LE: loop exit
PB: predicated region body
PF: predicated region fallthrough
CT: control target
= control target key end

     0   :  { %10 = vsyncpa [#allocation3], 0  ;;  %s756_s0 = inlined_call_operand.hbm [shape: f32[128,128], index: 0, kind: input, shape index: {}]   ;;  %s757_s1 = inlined_call_operand.hbm [shape: bf16[128,256], index: 1, kind: input, shape index: {}]   ;;  %s758_s2 = inlined_call_operand.vmem [shape: f32[1,256], index: 2, kind: input, shape index: {}]   ;;  %s759_s3 = inlined_call_operand.hbm [shape: bf16[128,128], index: 3, kind: output, shape index: {0}]   ;;  %s760_s4 = inlined_call_operand.hbm [shape: f32[128,128], index: 4, kind: output, shape index: {1}]  }
   0x1   :  { %11 = vsyncpa [#allocation6], 0 }
   0x2   :  { %12 = vsyncpa [#allocation4], 0 }
   0x3   :  { %13 = vsyncpa [#allocation9], 0  ;;  %s654_s15 = smov [#allocation2]  }
   0x4   :  { %s19_s16 = sshll.u32 %s654_s15, 4  ;;  %s20_s16 = int_to_ptr.vmem [resolvable:$true] %s19_s16 }
   0x5   :  { %s574_s17 = scalar_lea.vmem %s20_s16, 2048  ;;  %p579_p1 = scmp.lt.s32.totalorder %s20_s16, %s20_s16 }
   0x6   :  { %p575_p0 = scmp.ne.s32.totalorder %s20_s16, %s574_s17  ;;  %p580_p2 = scmp.lt.s32.totalorder %s574_s17, %s574_s17 }
   0x8   :  { %p581_p3 = por %p580_p2, %p579_p1 }
   0xa   :  { %p582_p4 = pnand %p581_p3, %p575_p0 }
   0xc   :  { %585 = shalt.err (!%p582_p4)
}
   0xd   :  { %s655_s18 = smov 128   ;;  %s656_s19 = smov 8  }
   0xe   :  { %25 = dma.hbm_to_vmem [thread:$0]  %s756_s0, 2048, %s20_s16, [#allocation3], %s655_s18, %s655_s18, %s656_s19  }
   0xf   :  { %s657_s22 = smov [#allocation5]  }
  0x10   :  { %s31_s23 = sshll.u32 %s657_s22, 4  ;;  %s32_s23 = int_to_ptr.vmem [resolvable:$true] %s31_s23 }
  0x11   :  { %s594_s24 = scalar_lea.vmem %s32_s23, 2048  ;;  %p599_p6 = scmp.lt.s32.totalorder %s32_s23, %s32_s23 }
  0x12   :  { %p595_p5 = scmp.ne.s32.totalorder %s32_s23, %s594_s24  ;;  %p600_p7 = scmp.lt.s32.totalorder %s594_s24, %s594_s24 }
  0x14   :  { %p601_p8 = por %p600_p7, %p599_p6 }
  0x16   :  { %p602_p9 = pnand %p601_p8, %p595_p5 }
  0x18   :  { %605 = shalt.err (!%p602_p9)
}
  0x19   :  { %37 = dma.hbm_to_vmem [thread:$0]  %s757_s1, 2048, %s32_s23, [#allocation6], %s655_s18, %s655_s18, %s656_s19  }
  0x1a   :  { %646 = dma.done.wait [#allocation3], 2048  }
  0x1b   :  { %647 = vsyncadd [#allocation3], 4294965248 }
  0x1c   :  { %648 = dma.done.wait [#allocation6], 2048  }
  0x1d   :  { %649 = vsyncadd [#allocation6], 4294965248  ;;  %v658_v0 = vmov 0   ;;  %v542_v1 = vld [vmem:[#allocation5 + $0x74] ss:$8 sps:$4 sm:$0xff]   ;;  %v47_v17 = vld [vmem:[#allocation2] sm:$0xff]  ;;  %v89_v41 = vlaneseq }
  0x1e   :  { %211 = vmatprep.mubr.bf16.mxu0 %v658_v0  ;;  %251 = vmatprep.mubr.bf16.mxu1 %v658_v0  ;;  %v544_v2 = vld [vmem:[#allocation5 + $0x70] ss:$8 sps:$4 sm:$0xff]   ;;  %v545_v3 = vld [vmem:[#allocation5 + $0x64] ss:$8 sps:$4 sm:$0xff]   ;;  %v547_v4 = vld [vmem:[#allocation5 + $0x60] ss:$8 sps:$4 sm:$0xff]  }
  0x1f   :  { %179 = vmatprep.subr.bf16.mxu0 %v542_v1  ;;  %517 = vmatprep.subr.bf16.mxu1 %v542_v1  ;;  %v548_v5 = vld [vmem:[#allocation5 + $0x54] ss:$8 sps:$4 sm:$0xff]   ;;  %v550_v6 = vld [vmem:[#allocation5 + $0x50] ss:$8 sps:$4 sm:$0xff]   ;;  %v551_v7 = vld [vmem:[#allocation5 + $0x44] ss:$8 sps:$4 sm:$0xff]  }
  0x20   :  { %180 = vmatpush1.bf16.msra.mxu0 %v544_v2  ;;  %525 = vmatpush1.bf16.msra.mxu1 %v544_v2  ;;  %v553_v8 = vld [vmem:[#allocation5 + $0x40] ss:$8 sps:$4 sm:$0xff]   ;;  %v554_v9 = vld [vmem:[#allocation5 + $0x34] ss:$8 sps:$4 sm:$0xff]   ;;  %v556_v10 = vld [vmem:[#allocation5 + $0x30] ss:$8 sps:$4 sm:$0xff]  }
  0x21   :  { %181 = vmatprep.subr.bf16.mxu0 %v545_v3  ;;  %518 = vmatprep.subr.bf16.mxu1 %v545_v3  ;;  %v557_v11 = vld [vmem:[#allocation5 + $0x24] ss:$8 sps:$4 sm:$0xff]   ;;  %v559_v12 = vld [vmem:[#allocation5 + $0x20] ss:$8 sps:$4 sm:$0xff]   ;;  %v560_v13 = vld [vmem:[#allocation5 + $0x14] ss:$8 sps:$4 sm:$0xff]  }
  0x22   :  { %v562_v14 = vld [vmem:[#allocation5 + $0x10] ss:$8 sps:$4 sm:$0xff]   ;;  %v563_v15 = vld [vmem:[#allocation5 + $0x4] ss:$8 sps:$4 sm:$0xff]   ;;  %v565_v16 = vld [vmem:[#allocation5] ss:$8 sps:$4 sm:$0xff]  }
  0x23   :  { %v48_v18 = vld [vmem:[#allocation2 + $0x8] sm:$0xff]  ;;  %v55_v19 = vld [vmem:[#allocation2 + $0x40] sm:$0xff]  ;;  %v49_v23 = vld [vmem:[#allocation2 + $0x10] sm:$0xff]  ;;  %v90_v42 = vshrl.u32 %v89_v41, 7  ;;  %s660_s28 = smov [#allocation8]  }
  0x24   :  { %182 = vmatpush1.bf16.msra.mxu0 %v547_v4  ;;  %526 = vmatpush1.bf16.msra.mxu1 %v547_v4  ;;  %v56_v20 = vld [vmem:[#allocation2 + $0x48] sm:$0xff]  ;;  %v63_v21 = vpack.c.bf16 %v48_v18, %v47_v17  ;;  %v50_v24 = vld [vmem:[#allocation2 + $0x18] sm:$0xff]  ;;  %v57_v25 = vld [vmem:[#allocation2 + $0x50] sm:$0xff]  ;;  %s405_s29 = sshll.u32 %s660_s28, 4  ;;  %s406_s29 = int_to_ptr.vmem [resolvable:$true] %s405_s29 }
  0x25   :  { %183 = vmatprep.subr.bf16.mxu0 %v548_v5  ;;  %519 = vmatprep.subr.bf16.mxu1 %v548_v5  ;;  %v67_v22 = vpack.c.bf16 %v56_v20, %v55_v19  ;;  %v58_v26 = vld [vmem:[#allocation2 + $0x58] sm:$0xff]  ;;  %v64_v27 = vpack.c.bf16 %v50_v24, %v49_v23  ;;  %v51_v29 = vld [vmem:[#allocation2 + $0x20] sm:$0xff]  ;;  %v52_v30 = vld [vmem:[#allocation2 + $0x28] sm:$0xff]  ;;  %v95_v43 = vsub.s32 1, %v90_v42  ;;  %v91_v44 = vsub.s32 0, %v90_v42 }
  0x26   :  { %v68_v28 = vpack.c.bf16 %v58_v26, %v57_v25  ;;  %v59_v31 = vld [vmem:[#allocation2 + $0x60] sm:$0xff]  ;;  %v60_v32 = vld [vmem:[#allocation2 + $0x68] sm:$0xff]  ;;  %v65_v33 = vpack.c.bf16 %v52_v30, %v51_v29  ;;  %v53_v35 = vld [vmem:[#allocation2 + $0x30] sm:$0xff] }
  0x27   :  { %v69_v34 = vpack.c.bf16 %v60_v32, %v59_v31  ;;  %v54_v36 = vld [vmem:[#allocation2 + $0x38] sm:$0xff]  ;;  %v61_v37 = vld [vmem:[#allocation2 + $0x70] sm:$0xff]  ;;  %v87_v45 = vld [vmem:[%s758_s2] sm:$0x3]  ;;  %s659_s2 = smov [#allocation7]  }
  0x28   :  { %184 = vmatpush1.bf16.msra.mxu0 %v550_v6  ;;  %527 = vmatpush1.bf16.msra.mxu1 %v550_v6  ;;  %v62_v38 = vld [vmem:[#allocation2 + $0x78] sm:$0xff]  ;;  %v66_v39 = vpack.c.bf16 %v54_v36, %v53_v35  ;;  %v711_v46 = vrot.slane %v87_v45, %v95_v43  ;;  %v713_v49 = vrot.slane %v87_v45, %v91_v44  ;;  %s393_s27 = sshll.u32 %s659_s2, 4  ;;  %s394_s27 = int_to_ptr.vmem [resolvable:$true] %s393_s27 }
  0x29   :  { %185 = vmatprep.subr.bf16.mxu0 %v551_v7  ;;  %520 = vmatprep.subr.bf16.mxu1 %v551_v7  ;;  %v70_v40 = vpack.c.bf16 %v62_v38, %v61_v37  ;;  %s606_s30 = scalar_lea.vmem %s394_s27, 1024  ;;  %p611_p11 = scmp.lt.s32.totalorder %s394_s27, %s394_s27 }
  0x2a   :  { %p607_p10 = scmp.ne.s32.totalorder %s394_s27, %s606_s30  ;;  %p612_p12 = scmp.lt.s32.totalorder %s606_s30, %s606_s30 }
  0x2c   :  { %186 = vmatpush1.bf16.msra.mxu0 %v553_v8  ;;  %528 = vmatpush1.bf16.msra.mxu1 %v553_v8  ;;  %p613_p13 = por %p612_p12, %p611_p11 }
  0x2d   :  { %187 = vmatprep.subr.bf16.mxu0 %v554_v9  ;;  %521 = vmatprep.subr.bf16.mxu1 %v554_v9 }
  0x2e   :  { %p614_p0 = pnand %p613_p13, %p607_p10 }
  0x30   :  { %188 = vmatpush1.bf16.msra.mxu0 %v556_v10  ;;  %529 = vmatpush1.bf16.msra.mxu1 %v556_v10 }
  0x31   :  { %189 = vmatprep.subr.bf16.mxu0 %v557_v11  ;;  %522 = vmatprep.subr.bf16.mxu1 %v557_v11 }
  0x34   :  { %190 = vmatpush1.bf16.msra.mxu0 %v559_v12  ;;  %530 = vmatpush1.bf16.msra.mxu1 %v559_v12 }
  0x35   :  { %191 = vmatprep.subr.bf16.mxu0 %v560_v13  ;;  %523 = vmatprep.subr.bf16.mxu1 %v560_v13 }
  0x38   :  { %192 = vmatpush1.bf16.msra.mxu0 %v562_v14  ;;  %531 = vmatpush1.bf16.msra.mxu1 %v562_v14 }
  0x39   :  { %193 = vmatprep.subr.bf16.mxu0 %v563_v15  ;;  %524 = vmatprep.subr.bf16.mxu1 %v563_v15 }
  0x3c   :  { %194 = vmatpush1.bf16.msra.mxu0 %v565_v16  ;;  %532 = vmatpush1.bf16.msra.mxu1 %v565_v16 }
  0x3f   :  { %212 = vmatmul.mubr.bf16.vlgmr.msra.gmra.mxu0 %v63_v21  ;;  %252 = vmatmul.mubr.bf16.vlgmr.msra.gmra.mxu1 %v67_v22 }
  0x40   :  { %221 = vmatprep.mubr.bf16.mxu0 %v658_v0  ;;  %261 = vmatprep.mubr.bf16.mxu1 %v658_v0 }
  0x47   :  { %222 = vmatmul.mubr.bf16.gmra.mxu0 %v64_v27  ;;  %262 = vmatmul.mubr.bf16.gmra.mxu1 %v68_v28 }
  0x48   :  { %231 = vmatprep.mubr.bf16.mxu0 %v658_v0  ;;  %271 = vmatprep.mubr.bf16.mxu1 %v658_v0 }
  0x4f   :  { %232 = vmatmul.mubr.bf16.gmra.mxu0 %v65_v33  ;;  %272 = vmatmul.mubr.bf16.gmra.mxu1 %v69_v34 }
  0x50   :  { %241 = vmatprep.mubr.bf16.mxu0 %v658_v0  ;;  %281 = vmatprep.mubr.bf16.mxu1 %v658_v0 }
  0x57   :  { %242 = vmatmul.mubr.bf16.gmra.mxu0 %v66_v39  ;;  %282 = vmatmul.mubr.bf16.gmra.mxu1 %v70_v40 }
  0xff   :  { %v213_v47 = vpop.f32.mrf.mxu0  ;;  %v253_v48 = vpop.f32.mrf.mxu1 }
 0x100   :  { %v214_v56 = vadd.f32 %v213_v47, %v713_v49  ;;  %v254_v57 = vadd.f32 %v253_v48, %v713_v49 }
 0x101   :  { %v215_v50 = vpop.f32.mrf.mxu0  ;;  %v255_v51 = vpop.f32.mrf.mxu1 }
 0x102   :  { %v216_v52 = vadd.f32 %v215_v50, %v711_v46  ;;  %v256_v53 = vadd.f32 %v255_v51, %v711_v46 }
 0x103   :  { %v217_v54 = vpop.f32.mrf.mxu0  ;;  %v257_v55 = vpop.f32.mrf.mxu1 }
 0x104   :  { %372 = vst [vmem:[#allocation8] sm:$0xff] %v216_v52  ;;  %380 = vst [vmem:[#allocation8 + $0x40] sm:$0xff] %v256_v53  ;;  %v218_v58 = vadd.f32 %v217_v54, %v713_v49  ;;  %v258_v59 = vadd.f32 %v257_v55, %v713_v49 }
 0x105   :  { %v219_v60 = vpop.f32.mrf.mxu0  ;;  %v259_v61 = vpop.f32.mrf.mxu1 }
 0x106   :  { %v473_v62 = vpack.c.bf16 %v218_v58, %v214_v56  ;;  %v493_v63 = vpack.c.bf16 %v258_v59, %v254_v57  ;;  %v220_v0 = vadd.f32 %v219_v60, %v711_v46  ;;  %v260_v1 = vadd.f32 %v259_v61, %v711_v46 }
 0x107   :  { %v223_v2 = vpop.f32.mrf.mxu0  ;;  %v263_v3 = vpop.f32.mrf.mxu1 }
 0x108   :  { %474 = vst [vmem:[#allocation7] sm:$0xff] %v473_v62   ;;  %513 = vst [vmem:[#allocation7 + $0x20] sm:$0xff] %v493_v63   ;;  %v224_v10 = vadd.f32 %v223_v2, %v713_v49  ;;  %v264_v11 = vadd.f32 %v263_v3, %v713_v49 }
 0x109   :  { %373 = vst [vmem:[#allocation8 + $0x8] sm:$0xff] %v220_v0  ;;  %381 = vst [vmem:[#allocation8 + $0x48] sm:$0xff] %v260_v1  ;;  %v225_v4 = vpop.f32.mrf.mxu0  ;;  %v265_v5 = vpop.f32.mrf.mxu1 }
 0x10a   :  { %v226_v6 = vadd.f32 %v225_v4, %v711_v46  ;;  %v266_v7 = vadd.f32 %v265_v5, %v711_v46 }
 0x10b   :  { %v227_v8 = vpop.f32.mrf.mxu0  ;;  %v267_v9 = vpop.f32.mrf.mxu1 }
 0x10c   :  { %374 = vst [vmem:[#allocation8 + $0x10] sm:$0xff] %v226_v6  ;;  %382 = vst [vmem:[#allocation8 + $0x50] sm:$0xff] %v266_v7  ;;  %v228_v12 = vadd.f32 %v227_v8, %v713_v49  ;;  %v268_v13 = vadd.f32 %v267_v9, %v713_v49 }
 0x10d   :  { %v229_v14 = vpop.f32.mrf.mxu0  ;;  %v269_v15 = vpop.f32.mrf.mxu1 }
 0x10e   :  { %v478_v16 = vpack.c.bf16 %v228_v12, %v224_v10  ;;  %v498_v17 = vpack.c.bf16 %v268_v13, %v264_v11  ;;  %v230_v18 = vadd.f32 %v229_v14, %v711_v46  ;;  %v270_v19 = vadd.f32 %v269_v15, %v711_v46 }
 0x10f   :  { %v233_v20 = vpop.f32.mrf.mxu0  ;;  %v273_v21 = vpop.f32.mrf.mxu1 }
 0x110   :  { %510 = vst [vmem:[#allocation7 + $0x8] sm:$0xff] %v478_v16   ;;  %514 = vst [vmem:[#allocation7 + $0x28] sm:$0xff] %v498_v17   ;;  %v234_v28 = vadd.f32 %v233_v20, %v713_v49  ;;  %v274_v29 = vadd.f32 %v273_v21, %v713_v49 }
 0x111   :  { %375 = vst [vmem:[#allocation8 + $0x18] sm:$0xff] %v230_v18  ;;  %383 = vst [vmem:[#allocation8 + $0x58] sm:$0xff] %v270_v19  ;;  %v235_v22 = vpop.f32.mrf.mxu0  ;;  %v275_v23 = vpop.f32.mrf.mxu1 }
 0x112   :  { %v236_v24 = vadd.f32 %v235_v22, %v711_v46  ;;  %v276_v25 = vadd.f32 %v275_v23, %v711_v46 }
 0x113   :  { %v237_v26 = vpop.f32.mrf.mxu0  ;;  %v277_v27 = vpop.f32.mrf.mxu1 }
 0x114   :  { %376 = vst [vmem:[#allocation8 + $0x20] sm:$0xff] %v236_v24  ;;  %384 = vst [vmem:[#allocation8 + $0x60] sm:$0xff] %v276_v25  ;;  %v238_v30 = vadd.f32 %v237_v26, %v713_v49  ;;  %v278_v31 = vadd.f32 %v277_v27, %v713_v49 }
 0x115   :  { %v239_v32 = vpop.f32.mrf.mxu0  ;;  %v279_v33 = vpop.f32.mrf.mxu1 }
 0x116   :  { %v483_v34 = vpack.c.bf16 %v238_v30, %v234_v28  ;;  %v503_v35 = vpack.c.bf16 %v278_v31, %v274_v29  ;;  %v240_v36 = vadd.f32 %v239_v32, %v711_v46  ;;  %v280_v37 = vadd.f32 %v279_v33, %v711_v46 }
 0x117   :  { %v243_v38 = vpop.f32.mrf.mxu0  ;;  %v283_v39 = vpop.f32.mrf.mxu1 }
 0x118   :  { %511 = vst [vmem:[#allocation7 + $0x10] sm:$0xff] %v483_v34   ;;  %515 = vst [vmem:[#allocation7 + $0x30] sm:$0xff] %v503_v35   ;;  %v244_v47 = vadd.f32 %v243_v38, %v713_v49  ;;  %v284_v48 = vadd.f32 %v283_v39, %v713_v49 }
 0x119   :  { %377 = vst [vmem:[#allocation8 + $0x28] sm:$0xff] %v240_v36  ;;  %385 = vst [vmem:[#allocation8 + $0x68] sm:$0xff] %v280_v37  ;;  %v245_v40 = vpop.f32.mrf.mxu0  ;;  %v285_v41 = vpop.f32.mrf.mxu1 }
 0x11a   :  { %v246_v42 = vadd.f32 %v245_v40, %v711_v46  ;;  %v286_v43 = vadd.f32 %v285_v41, %v711_v46 }
 0x11b   :  { %v247_v44 = vpop.f32.mrf.mxu0  ;;  %v287_v45 = vpop.f32.mrf.mxu1 }
 0x11c   :  { %378 = vst [vmem:[#allocation8 + $0x30] sm:$0xff] %v246_v42  ;;  %386 = vst [vmem:[#allocation8 + $0x70] sm:$0xff] %v286_v43  ;;  %v248_v50 = vadd.f32 %v247_v44, %v713_v49  ;;  %v288_v51 = vadd.f32 %v287_v45, %v713_v49 }
 0x11d   :  { %v249_v52 = vpop.f32.mrf.mxu0  ;;  %v289_v53 = vpop.f32.mrf.mxu1 }
 0x11e   :  { %v488_v54 = vpack.c.bf16 %v248_v50, %v244_v47  ;;  %v508_v55 = vpack.c.bf16 %v288_v51, %v284_v48  ;;  %v250_v56 = vadd.f32 %v249_v52, %v711_v46  ;;  %v290_v57 = vadd.f32 %v289_v53, %v711_v46 }
 0x120   :  { %512 = vst [vmem:[#allocation7 + $0x18] sm:$0xff] %v488_v54   ;;  %516 = vst [vmem:[#allocation7 + $0x38] sm:$0xff] %v508_v55  }
 0x121   :  { %379 = vst [vmem:[#allocation8 + $0x38] sm:$0xff] %v250_v56  ;;  %387 = vst [vmem:[#allocation8 + $0x78] sm:$0xff] %v290_v57 }
 0x122   :  { %617 = shalt.err (!%p614_p0)
}
 0x123   :  { %s661_s5 = smov 64   ;;  %s662_s6 = smov 4  }
 0x124   :  { %399 = dma.vmem_to_hbm [thread:$0]  %s394_s27, 1024, %s759_s3, [#allocation4], %s661_s5, %s661_s5, %s662_s6  }
 0x125   :  { %s626_s9 = scalar_lea.vmem %s406_s29, 2048  ;;  %p631_p2 = scmp.lt.s32.totalorder %s406_s29, %s406_s29 }
 0x126   :  { %p627_p1 = scmp.ne.s32.totalorder %s406_s29, %s626_s9  ;;  %p632_p3 = scmp.lt.s32.totalorder %s626_s9, %s626_s9 }
 0x128   :  { %p633_p4 = por %p632_p3, %p631_p2 }
 0x12a   :  { %p634_p5 = pnand %p633_p4, %p627_p1 }
 0x12c   :  { %637 = shalt.err (!%p634_p5)
}
 0x12d   :  { %411 = dma.vmem_to_hbm [thread:$0]  %s406_s29, 2048, %s760_s4, [#allocation9], %s655_s18, %s655_s18, %s656_s19  }
 0x12e   :  { %650 = dma.done.wait [#allocation4], 1024  }
 0x12f   :  { %651 = vsyncadd [#allocation4], 4294966272 }
 0x130   :  { %652 = dma.done.wait [#allocation9], 2048  }
 0x131   :  { %653 = vsyncadd [#allocation9], 4294965248 }
 0x132   :  { %418 = vsyncpa [#allocation3], 1 }
 0x133   :  { %419 = vsyncpa [#allocation6], 1 }
 0x134   :  { %420 = vsyncpa [#allocation4], 1 }
 0x135   :  { %421 = vsyncpa [#allocation9], 1 }

</bundles_post_ra>
